<compile_context>
chip_gen: v5e
topology: v5e:2x2
jax: 0.10.0
libtpu: 0.0.40
codegen_flags: <defaults>
</compile_context>

<pallas_src>
import functools

import jax
import jax.numpy as jnp
from jax.experimental import pallas as pl
from jax.experimental.pallas import tpu as pltpu

_LANES = 128
_SUBLANES = 8


def _round_up(n, m):
    return -(-n // m) * m


def _sqdiff_partial_kernel(x_ref, t_ref, o_ref, acc_ref, *,
                           row_tile, acc_rows, blocks_per_split,
                           valid_rows, needs_mask):
    s = pl.program_id(0)   # split axis ("parallel"; shards across TCs on v7x)
    i = pl.program_id(1)   # reduction axis ("arbitrary"; sequential per split)

    @pl.when(i == 0)
    def _init():
        acc_ref[...] = jnp.zeros_like(acc_ref)

    d = x_ref[...].astype(jnp.float32) - t_ref[...].astype(jnp.float32)

    def accumulate(dv):
        # Fold the (row_tile, 128) squared diff into the fixed (acc_rows, 128)
        # accumulator: one acc load + one acc store per grid step, the rest is
        # pure VPU adds/muls on in-flight values.
        part = acc_ref[...]
        for j in range(row_tile // acc_rows):
            c = dv[j * acc_rows:(j + 1) * acc_rows, :]
            part = part + c * c
        acc_ref[...] = part

    if not needs_mask:
        # rows % row_tile == 0: every block is fully valid, no masking at all.
        accumulate(d)
    else:
        # Only the single tail block needs the iota/compare/select path.
        row_base = (s * blocks_per_split + i) * row_tile
        is_tail = row_base + row_tile > valid_rows

        @pl.when(jnp.logical_not(is_tail))
        def _fast():
            accumulate(d)

        @pl.when(is_tail)
        def _masked():
            row_ids = row_base + jax.lax.broadcasted_iota(
                jnp.int32, (row_tile, _LANES), 0)
            accumulate(jnp.where(row_ids < valid_rows, d, 0.0))

    # One cross-lane/sublane reduction + scalar SMEM store per split.
    @pl.when(i == pl.num_programs(1) - 1)
    def _finalize():
        o_ref[0, 0] = jnp.sum(acc_ref[...])


def content_loss_forward(x, target, *, row_tile=4096, acc_rows=512,
                         num_splits=2):
    """Returns (output, loss) where output == x and loss == mse(x, target)."""
    assert x.shape == target.shape, "input/target shape mismatch"
    n_elems = x.size
    itemsize = jnp.dtype(x.dtype).itemsize

    # Flatten (row-major reshape: no copy). No dtype cast here; the f32 upcast
    # happens inside the kernel so narrow dtypes stream at their native bytes.
    xf = x.reshape(-1)
    tf = target.reshape(-1)

    rows = n_elems // _LANES
    tail = n_elems - rows * _LANES

    # Ragged tail (<128 elems): tiny XLA reduce outside the kernel instead of
    # a full jnp.pad copy of both inputs.
    tail_sum = jnp.float32(0.0)
    if tail:
        xt = xf[rows * _LANES:].astype(jnp.float32)
        tt = tf[rows * _LANES:].astype(jnp.float32)
        tail_sum = jnp.sum((xt - tt) ** 2)

    if rows == 0:
        # Whole input fits in the tail path; nothing for the kernel to do.
        return x, tail_sum / jnp.float32(n_elems)

    # Lane-dense 2D slab over the aligned prefix. For the common aligned case
    # (n % 128 == 0) this is a pure reshape (no copy).
    x2 = xf[:rows * _LANES].reshape(rows, _LANES)
    t2 = tf[:rows * _LANES].reshape(rows, _LANES)

    # Dtype-aware sublane packing granularity: f32 -> 8, bf16 -> 16, int8 -> 32.
    sub_mult = _SUBLANES * max(1, 4 // itemsize)

    # Tile sizing: big enough to amortize the ~0.35us/step overhead, small
    # enough that 2 inputs x 2 pipeline buffers x block + acc fits well inside
    # the 32 MiB scoped-VMEM limit we request below.
    row_tile = max(sub_mult, min(row_tile, _round_up(rows, sub_mult)))
    row_tile = _round_up(row_tile, sub_mult)
    if row_tile > acc_rows:
        acc_rows_eff = acc_rows
        row_tile = _round_up(row_tile, acc_rows)   # acc must divide the tile
    else:
        acc_rows_eff = row_tile

    total_blocks = pl.cdiv(rows, row_tile)
    # Only split when it divides evenly: no clamped dummy blocks, no wasted DMA.
    if num_splits > 1 and total_blocks >= num_splits and total_blocks % num_splits == 0:
        splits = num_splits
    else:
        splits = 1
    blocks_per_split = total_blocks // splits

    needs_mask = (rows % row_tile) != 0

    kernel = functools.partial(
        _sqdiff_partial_kernel,
        row_tile=row_tile,
        acc_rows=acc_rows_eff,
        blocks_per_split=blocks_per_split,
        valid_rows=rows,
        needs_mask=needs_mask,
    )

    def in_map(s, i):
        return (s * blocks_per_split + i, 0)

    partials = pl.pallas_call(
        kernel,
        out_shape=jax.ShapeDtypeStruct((splits, 1), jnp.float32),
        grid_spec=pltpu.PrefetchScalarGridSpec(
            num_scalar_prefetch=0,
            grid=(splits, blocks_per_split),
            in_specs=[
                pl.BlockSpec((row_tile, _LANES), in_map),
                pl.BlockSpec((row_tile, _LANES), in_map),
            ],
            out_specs=pl.BlockSpec(
                (1, 1), lambda s, i: (s, 0), memory_space=pltpu.SMEM
            ),
            scratch_shapes=[pltpu.VMEM((acc_rows_eff, _LANES), jnp.float32)],
        ),
        compiler_params=pltpu.CompilerParams(
            dimension_semantics=("parallel", "arbitrary"),
            vmem_limit_bytes=32 * 1024 * 1024,
        ),
        cost_estimate=pl.CostEstimate(
            flops=3 * rows * _LANES,
            transcendentals=0,
            bytes_accessed=2 * rows * _LANES * itemsize + splits * 4,
        ),
    )(x2, t2)

    loss = (jnp.sum(partials) + tail_sum) / jnp.float32(n_elems)
    # ContentLoss.forward returns its input unchanged (identity passthrough).
    return x, loss


if __name__ == "__main__":
    key = jax.random.PRNGKey(0)
    k1, k2, k3, k4, k5, k6, k7, k8 = jax.random.split(key, 8)

    # Small NCHW conv-feature-map shape (the spec's nominal input).
    shape = (2, 4, 16, 16)
    x = jax.random.normal(k1, shape, dtype=jnp.float32)
    target = jax.random.normal(k2, shape, dtype=jnp.float32)  # detached target

    out, loss = content_loss_forward(x, target)
    out = jax.block_until_ready(out)
    loss = jax.block_until_ready(loss)
    ref_loss = jnp.mean((x - target) ** 2)
    assert jnp.allclose(loss, ref_loss, rtol=1e-5, atol=1e-6), (loss, ref_loss)
    assert jnp.array_equal(out, x)

    # Medium case: multi-block accumulation + even 2-way split (4 blocks / 2 splits).
    shape_m = (8, 64, 64, 64)  # 2,097,152 elems -> 16384 rows -> 4 tiles of 4096
    xm = jax.random.normal(k3, shape_m, dtype=jnp.float32)
    tm = jax.random.normal(k4, shape_m, dtype=jnp.float32)
    _, loss_m = content_loss_forward(xm, tm)
    loss_m = jax.block_until_ready(loss_m)
    ref_m = jnp.mean((xm - tm) ** 2)
    assert jnp.allclose(loss_m, ref_m, rtol=1e-5, atol=1e-6), (loss_m, ref_m)

    # Ragged case (flat size not a multiple of 128): aligned prefix in-kernel,
    # tail via the outside reduce, last-block row mask exercised.
    shape_r = (2, 3, 7, 5)  # 210 elems
    xr = jax.random.normal(k5, shape_r, dtype=jnp.float32)
    tr = jax.random.normal(k6, shape_r, dtype=jnp.float32)
    _, loss_r = content_loss_forward(xr, tr)
    loss_r = jax.block_until_ready(loss_r)
    ref_r = jnp.mean((xr - tr) ** 2)
    assert jnp.allclose(loss_r, ref_r, rtol=1e-5, atol=1e-6), (loss_r, ref_r)

    # bf16 case: exercises dtype-aware sublane rounding + in-kernel f32 upcast.
    shape_b = (2, 8, 32, 32)  # 16384 elems -> 128 rows
    xb = jax.random.normal(k7, shape_b, dtype=jnp.bfloat16)
    tb = jax.random.normal(k8, shape_b, dtype=jnp.bfloat16)
    _, loss_b = content_loss_forward(xb, tb)
    loss_b = jax.block_until_ready(loss_b)
    ref_b = jnp.mean((xb.astype(jnp.float32) - tb.astype(jnp.float32)) ** 2)
    assert jnp.allclose(loss_b, ref_b, rtol=1e-5, atol=1e-6), (loss_b, ref_b)

    print("KERNEL_OK")
</pallas_src>

<mosaic_0001>
module attributes {stable_mosaic.version = 11 : i64} {
  func.func @_sqdiff_partial_kernel(%arg0: i32, %arg1: i32, %arg2: memref<16x128xf32, #tpu.memory_space<vmem>>, %arg3: memref<16x128xf32, #tpu.memory_space<vmem>>, %arg4: memref<1x1xf32, #tpu.memory_space<smem>>, %arg5: memref<16x128xf32, #tpu.memory_space<vmem>>) attributes {dimension_semantics = [#tpu.dimension_semantics<parallel>, #tpu.dimension_semantics<arbitrary>], iteration_bounds = array<i64: 1, 1>, scalar_prefetch = 0 : i64, scratch_operands = 1 : i64, tpu.core_type = #tpu.core_type<tc>, window_params = [{transform_indices = @transform_0, window_bounds = array<i64: 16, 128>}, {transform_indices = @transform_1, window_bounds = array<i64: 16, 128>}, {transform_indices = @transform_2, window_bounds = array<i64: 1, 1>}]} {
    %c0_i32 = arith.constant 0 : i32
    %0 = arith.cmpi eq, %arg1, %c0_i32 : i32
    %1 = arith.extui %0 : i1 to i32
    %c0_i32_0 = arith.constant 0 : i32
    %2 = arith.cmpi ne, %1, %c0_i32_0 : i32
    scf.if %2 {
      %cst = arith.constant 0.000000e+00 : f32
      %13 = vector.broadcast %cst : f32 to vector<16x128xf32>
      %c0_10 = arith.constant 0 : index
      %c0_11 = arith.constant 0 : index
      %14 = vector.load %arg5[%c0_10, %c0_11] : memref<16x128xf32, #tpu.memory_space<vmem>>, vector<16x128xf32>
      tpu.vector_store %arg5[%c0_10, %c0_11], %13 {strides = array<i32>} : memref<16x128xf32, #tpu.memory_space<vmem>>, vector<16x128xf32>,
    } else {
    }
    %c0 = arith.constant 0 : index
    %c0_1 = arith.constant 0 : index
    %3 = vector.load %arg2[%c0, %c0_1] : memref<16x128xf32, #tpu.memory_space<vmem>>, vector<16x128xf32>
    %c0_2 = arith.constant 0 : index
    %c0_3 = arith.constant 0 : index
    %4 = vector.load %arg3[%c0_2, %c0_3] : memref<16x128xf32, #tpu.memory_space<vmem>>, vector<16x128xf32>
    %5 = arith.subf %3, %4 : vector<16x128xf32>
    %c0_4 = arith.constant 0 : index
    %c0_5 = arith.constant 0 : index
    %6 = vector.load %arg5[%c0_4, %c0_5] : memref<16x128xf32, #tpu.memory_space<vmem>>, vector<16x128xf32>
    %7 = arith.mulf %5, %5 : vector<16x128xf32>
    %8 = arith.addf %6, %7 : vector<16x128xf32>
    %c0_6 = arith.constant 0 : index
    %c0_7 = arith.constant 0 : index
    %9 = vector.load %arg5[%c0_6, %c0_7] : memref<16x128xf32, #tpu.memory_space<vmem>>, vector<16x128xf32>
    tpu.vector_store %arg5[%c0_6, %c0_7], %8 {strides = array<i32>} : memref<16x128xf32, #tpu.memory_space<vmem>>, vector<16x128xf32>,
    %c0_i32_8 = arith.constant 0 : i32
    %10 = arith.cmpi eq, %arg1, %c0_i32_8 : i32
    %11 = arith.extui %10 : i1 to i32
    %c0_i32_9 = arith.constant 0 : i32
    %12 = arith.cmpi ne, %11, %c0_i32_9 : i32
    scf.if %12 {
      %c0_10 = arith.constant 0 : index
      %c0_11 = arith.constant 0 : index
      %13 = vector.load %arg5[%c0_10, %c0_11] : memref<16x128xf32, #tpu.memory_space<vmem>>, vector<16x128xf32>
      %14 = vector.shape_cast %13 : vector<16x128xf32> to vector<1x16x128xf32>
      %cst = arith.constant dense<0.000000e+00> : vector<1xf32>
      %15 = vector.multi_reduction <add>, %14, %cst [1, 2] : vector<1x16x128xf32> to vector<1xf32>
      %16 = vector.shape_cast %15 : vector<1xf32> to vector<1x1x1xf32>
      %17 = vector.extract %16[0, 0, 0] : f32 from vector<1x1x1xf32>
      %c0_12 = arith.constant 0 : index
      %c0_13 = arith.constant 0 : index
      %18 = memref.load %arg4[%c0_12, %c0_13] : memref<1x1xf32, #tpu.memory_space<smem>>
      memref.store %17, %arg4[%c0_12, %c0_13] : memref<1x1xf32, #tpu.memory_space<smem>>
    } else {
    }
    return
  }
  func.func @transform_0(%arg0: i32, %arg1: i32) -> (i32, i32) {
    %c1_i32 = arith.constant 1 : i32
    %0 = arith.muli %arg0, %c1_i32 : i32
    %1 = arith.addi %0, %arg1 : i32
    %c0_i32 = arith.constant 0 : i32
    %c0_i32_0 = arith.constant 0 : i32
    return %1, %c0_i32 : i32, i32
  }
  func.func @transform_1(%arg0: i32, %arg1: i32) -> (i32, i32) {
    %c1_i32 = arith.constant 1 : i32
    %0 = arith.muli %arg0, %c1_i32 : i32
    %1 = arith.addi %0, %arg1 : i32
    %c0_i32 = arith.constant 0 : i32
    %c0_i32_0 = arith.constant 0 : i32
    return %1, %c0_i32 : i32, i32
  }
  func.func @transform_2(%arg0: i32, %arg1: i32) -> (i32, i32) {
    %c0_i32 = arith.constant 0 : i32
    %c0_i32_0 = arith.constant 0 : i32
    return %arg0, %c0_i32 : i32, i32
  }
}

</mosaic_0001>

<bundles_post_ra>
// kernel: tpu_custom_call.1
= control target key start
LH: loop header
LB: loop body
LE: loop exit
PB: predicated region body
PF: predicated region fallthrough
CT: control target
= control target key end

     0   :  { %7 = vsyncpa [#allocation4], 0  ;;  %s212_s0 = inlined_call_operand.hbm [shape: f32[16,128], index: 0, kind: input, shape index: {}]   ;;  %s213_s1 = inlined_call_operand.hbm [shape: f32[16,128], index: 1, kind: input, shape index: {}]   ;;  %s214_s2 = inlined_call_operand.hbm [shape: f32[1,1], index: 2, kind: output, shape index: {}]  }
   0x1   :  { %8 = vsyncpa [#allocation7], 0 }
   0x2   :  { %9 = vsyncpa [#allocation5], 0  ;;  %s18_s11 = sshll.u32 %s212_s0, 4  ;;  %s183_s12 = smov [#allocation3]   ;;  %s19_s11 = int_to_ptr.hbm [resolvable:$true] %s18_s11 }
   0x3   :  { %s20_s13 = sshll.u32 %s183_s12, 4  ;;  %s35_s16 = sshll.u32 %s213_s1, 4  ;;  %s21_s13 = int_to_ptr.vmem [resolvable:$true] %s20_s13  ;;  %s36_s16 = int_to_ptr.hbm [resolvable:$true] %s35_s16 }
   0x4   :  { %s184_s17 = smov 128   ;;  %s185_s18 = smov 8  }
   0x5   :  { %26 = dma.hbm_to_vmem [thread:$0]  %s19_s11, 256, %s21_s13, [#allocation4], %s184_s17, %s184_s17, %s185_s18  }
   0x6   :  { %s186_s19 = smov [#allocation6]  }
   0x7   :  { %s37_s20 = sshll.u32 %s186_s19, 4  ;;  %s38_s20 = int_to_ptr.vmem [resolvable:$true] %s37_s20 }
   0x8   :  { %43 = dma.hbm_to_vmem [thread:$0]  %s36_s16, 256, %s38_s20, [#allocation7], %s184_s17, %s184_s17, %s185_s18  }
   0x9   :  { %177 = dma.done.wait [#allocation4], 256  }
   0xa   :  { %178 = vsyncadd [#allocation4], 4294967040 }
   0xb   :  { %179 = dma.done.wait [#allocation7], 256  }
   0xc   :  { %180 = vsyncadd [#allocation7], 4294967040  ;;  %v62_v0 = vld [vmem:[#allocation3] sm:$0xff]  ;;  %v63_v1 = vld [vmem:[#allocation3 + $0x8] sm:$0xff]  ;;  %s98_s21 = sshll.u32 %s214_s2, 4  ;;  %s187_s23 = smov [#allocation8]   ;;  %s99_s21 = int_to_ptr.hbm [resolvable:$true] %s98_s21 }
   0xd   :  { %v64_v2 = vld [vmem:[#allocation6] sm:$0xff]  ;;  %v65_v3 = vld [vmem:[#allocation6 + $0x8] sm:$0xff] }
   0xe   :  { %v66_v4 = vsub.f32 %v62_v0, %v64_v2  ;;  %v67_v5 = vsub.f32 %v63_v1, %v65_v3 }
  0x10   :  { %v70_v6 = vmul.f32 %v66_v4, %v66_v4  ;;  %v71_v7 = vmul.f32 %v67_v5, %v67_v5 }
  0x12   :  { %v81_v8 = vadd.f32 %v71_v7, %v70_v6 }
  0x14   :  { %82 = vadd.xlane.f32.xlu0 %v81_v8 }
  0x87   :  { %v83_v9 = vpop.xlane.xlu0 %82 }
  0x88   :  { %v84_v10 = vrot.slane %v83_v9, 4 }
  0x8a   :  { %v85_v11 = vadd.f32 %v84_v10, %v83_v9 }
  0x8c   :  { %v86_v12 = vrot.slane %v85_v11, 2 }
  0x8e   :  { %v87_v13 = vadd.f32 %v86_v12, %v85_v11 }
  0x90   :  { %v88_v14 = vrot.slane %v87_v13, 1 }
  0x92   :  { %v89_v15 = vadd.f32 %v88_v14, %v87_v13 }
  0x94   :  { %110 = vpush %v89_v15 }
  0xc5   :  { %s111_s22 = spop %110 }
  0xc6   :  { %92 = sst [smem:[#allocation8]] %s111_s22 }
  0xc7   :  { %101 = dma.smem_to_hbm %s187_s23, 16, %s99_s21, [#allocation5]  }
  0xc8   :  { %181 = dma.done.wait [#allocation5], 16  }
  0xc9   :  { %182 = vsyncadd [#allocation5], 4294967280 }
  0xca   :  { %106 = sfence }
  0xcb   :  { %107 = vsyncpa [#allocation4], 1 }
  0xcc   :  { %108 = vsyncpa [#allocation7], 1 }
  0xcd   :  { %109 = vsyncpa [#allocation5], 1 }

</bundles_post_ra>
